<compile_context>
chip_gen: v5e
topology: v5e:2x2
jax: 0.10.0
libtpu: 0.0.40
codegen_flags: <defaults>
</compile_context>

<pallas_src>
import math
import jax
import jax.numpy as jnp
from jax.experimental import pallas as pl
from jax.experimental.pallas import tpu as pltpu


def data_embedding_kernel(x_ref, w_ref, add_ref, out_ref):
    # x_ref:   (R, K)        fused [x_prev | x | x_next | x_mark] rows (R = bt*L)
    # w_ref:   (K, d_model)  fused [Wc_tap0; Wc_tap1; Wc_tap2; W_time]   (VMEM-resident)
    # add_ref: (R, d_model)  (pe + b_conv + b_time) tiled over bt seqs    (VMEM-resident)
    # out_ref: (R, d_model)
    acc = jnp.dot(x_ref[...], w_ref[...], preferred_element_type=jnp.float32)
    out_ref[...] = (acc + add_ref[...]).astype(out_ref.dtype)


def _pick_batch_tile(B, L, d_model, K, target_rows=2048,
                     vmem_budget=16 * 1024 * 1024):
    """Sequences per grid step (bt).

    Legality: the row block (bt*L) must be a multiple of 8 OR span the full
    row extent (bt == B), and bt must divide B so the grid is exact.
    Preference: the largest legal tile that stays inside the VMEM budget and
    does not blow far past ~target_rows GEMM rows (amortizes the ~0.35us
    per-step overhead without starving double-buffering headroom).
    """
    def tile_bytes(bt):
        rows = bt * L
        # 2x double-buffered input + 2x double-buffered output + resident add (f32)
        return 4 * rows * (2 * K + 3 * d_model)

    legal = [bt for bt in range(1, B + 1)
             if B % bt == 0 and ((bt * L) % 8 == 0 or bt == B)]
    in_budget = [bt for bt in legal if tile_bytes(bt) <= vmem_budget]
    if not in_budget:
        # Rare (odd L and no 8-aligned divisor of B): best effort, smallest legal tile.
        return min(legal)
    under_target = [bt for bt in in_budget if bt * L <= target_rows]
    return max(under_target) if under_target else min(in_budget)


def data_embedding(x, x_mark, pe, w_conv, b_conv, w_time, b_time):
    B, L, c_in = x.shape
    d_inp = x_mark.shape[-1]
    d_model = w_conv.shape[-1]
    K = 3 * c_in + d_inp

    # --- wrapper-side fusion (tiny tensors; done once, not per grid step) ---
    # Conv1d(kernel=3, padding=1, padding_mode='zeros'):
    # out[t] = Wc[0] @ x[t-1] + Wc[1] @ x[t] + Wc[2] @ x[t+1]  (zero-padded ends).
    zero = jnp.zeros((B, 1, c_in), x.dtype)
    x_prev = jnp.concatenate([zero, x[:, :-1]], axis=1)
    x_next = jnp.concatenate([x[:, 1:], zero], axis=1)
    x_cat = jnp.concatenate([x_prev, x, x_next, x_mark], axis=-1)        # (B, L, K)

    w_cat = jnp.concatenate([w_conv[0], w_conv[1], w_conv[2], w_time],
                            axis=0)                                      # (K, d_model)
    add_term = pe + b_conv + b_time                                      # (L, d_model)

    bt = _pick_batch_tile(B, L, d_model, K)
    rows_per_tile = bt * L
    grid = (B // bt,)

    # Flatten to a 2-D GEMM: (B*L, K) @ (K, d_model). Tiles align to whole
    # sequences so the positional/bias add is identical for every tile.
    x_flat = x_cat.reshape(B * L, K)
    add_tiled = jnp.tile(add_term, (bt, 1))                              # (bt*L, d_model)

    out_flat = pl.pallas_call(
        data_embedding_kernel,
        out_shape=jax.ShapeDtypeStruct((B * L, d_model), jnp.float32),
        grid=grid,
        in_specs=[
            pl.BlockSpec((rows_per_tile, K), lambda i: (i, 0)),
            pl.BlockSpec((K, d_model), lambda i: (0, 0)),          # resident weights
            pl.BlockSpec((rows_per_tile, d_model), lambda i: (0, 0)),  # resident add
        ],
        out_specs=pl.BlockSpec((rows_per_tile, d_model), lambda i: (i, 0)),
        compiler_params=pltpu.CompilerParams(
            dimension_semantics=("parallel",)),
    )(x_flat, w_cat, add_tiled)

    return out_flat.reshape(B, L, d_model)


def make_positional_encoding(max_len, d_model):
    position = jnp.arange(max_len, dtype=jnp.float32)[:, None]          # (max_len, 1)
    div_term = jnp.exp(jnp.arange(0, d_model, 2, dtype=jnp.float32)
                       * (-math.log(10000.0) / d_model))                # (d_model/2,)
    pe = jnp.zeros((max_len, d_model), jnp.float32)
    pe = pe.at[:, 0::2].set(jnp.sin(position * div_term))
    pe = pe.at[:, 1::2].set(jnp.cos(position * div_term))
    return pe


def init_params(key, c_in, d_model, d_inp):
    k1, k2, k3, k4 = jax.random.split(key, 4)
    # Conv1d weight: PyTorch layout (d_model, c_in, 3); kaiming_normal fan_in,
    # leaky_relu gain. fan_in = c_in * kernel_size.
    kernel_size = 3
    fan_in = c_in * kernel_size
    gain = math.sqrt(2.0 / (1.0 + 0.01 ** 2))
    std = gain / math.sqrt(fan_in)
    w_conv_torch = jax.random.normal(k1, (d_model, c_in, kernel_size),
                                     jnp.float32) * std
    # Rearrange to tap-major (3, c_in, d_model) for the kernel's matmul.
    w_conv = jnp.transpose(w_conv_torch, (2, 1, 0))
    bound_c = 1.0 / math.sqrt(fan_in)
    b_conv = jax.random.uniform(k2, (1, d_model), jnp.float32,
                                -bound_c, bound_c)
    # Linear(d_inp, d_model): PyTorch default init.
    bound_t = 1.0 / math.sqrt(d_inp)
    w_time = jax.random.uniform(k3, (d_inp, d_model), jnp.float32,
                                -bound_t, bound_t)
    b_time = jax.random.uniform(k4, (1, d_model), jnp.float32,
                                -bound_t, bound_t)
    return w_conv, b_conv, w_time, b_time


def reference(x, x_mark, pe, w_conv, b_conv, w_time, b_time):
    # Pure-JAX reference of the same math (un-fused) for a sanity check.
    B, L, c_in = x.shape
    zero = jnp.zeros((B, 1, c_in), x.dtype)
    x_prev = jnp.concatenate([zero, x[:, :-1]], axis=1)
    x_next = jnp.concatenate([x[:, 1:], zero], axis=1)
    tok = (x_prev @ w_conv[0] + x @ w_conv[1] + x_next @ w_conv[2] + b_conv)
    tim = x_mark @ w_time + b_time
    return tok + tim + pe[None]


if __name__ == "__main__":
    B, L, c_in, d_model = 2, 8, 4, 32
    d_inp = 5  # freq='t'

    key = jax.random.PRNGKey(0)
    kx, km, kp = jax.random.split(key, 3)
    x = jax.random.normal(kx, (B, L, c_in), jnp.float32)
    x_mark = jax.random.normal(km, (B, L, d_inp), jnp.float32)

    w_conv, b_conv, w_time, b_time = init_params(kp, c_in, d_model, d_inp)
    pe_full = make_positional_encoding(5000, d_model)
    pe = pe_full[:L]  # PositionalEmbedding.forward slices to seq length

    out = data_embedding(x, x_mark, pe, w_conv, b_conv, w_time, b_time)
    out = jax.block_until_ready(out)

    ref = reference(x, x_mark, pe, w_conv, b_conv, w_time, b_time)
    assert out.shape == (B, L, d_model)
    assert jnp.allclose(out, ref, atol=1e-5, rtol=1e-5)
    print("KERNEL_OK")
</pallas_src>

<mosaic_0001>
module attributes {stable_mosaic.version = 11 : i64} {
  func.func @data_embedding_kernel(%arg0: i32, %arg1: memref<16x17xf32, #tpu.memory_space<vmem>>, %arg2: memref<17x32xf32, #tpu.memory_space<vmem>>, %arg3: memref<16x32xf32, #tpu.memory_space<vmem>>, %arg4: memref<16x32xf32, #tpu.memory_space<vmem>>) attributes {dimension_semantics = [#tpu.dimension_semantics<parallel>], iteration_bounds = array<i64: 1>, scalar_prefetch = 0 : i64, scratch_operands = 0 : i64, tpu.core_type = #tpu.core_type<tc>, window_params = [{transform_indices = @transform_0, window_bounds = array<i64: 16, 17>}, {pipeline_mode = #tpu.pipeline_mode<synchronous>, transform_indices = @transform_1, window_bounds = array<i64: 17, 32>}, {pipeline_mode = #tpu.pipeline_mode<synchronous>, transform_indices = @transform_2, window_bounds = array<i64: 16, 32>}, {transform_indices = @transform_3, window_bounds = array<i64: 16, 32>}]} {
    %c0 = arith.constant 0 : index
    %c0_0 = arith.constant 0 : index
    %0 = vector.load %arg1[%c0, %c0_0] : memref<16x17xf32, #tpu.memory_space<vmem>>, vector<16x17xf32>
    %c0_1 = arith.constant 0 : index
    %c0_2 = arith.constant 0 : index
    %1 = vector.load %arg2[%c0_1, %c0_2] : memref<17x32xf32, #tpu.memory_space<vmem>>, vector<17x32xf32>
    %cst = arith.constant dense<0.000000e+00> : vector<16x32xf32>
    %2 = tpu.matmul %0, %1, %cst {dimension_numbers = #tpu.dot_dimension_numbers<[1], [0], [0], [1], [0, 0, 1, 1], [], []>} : vector<16x17xf32>, vector<17x32xf32>, vector<16x32xf32> -> vector<16x32xf32>
    %c0_3 = arith.constant 0 : index
    %c0_4 = arith.constant 0 : index
    %3 = vector.load %arg3[%c0_3, %c0_4] : memref<16x32xf32, #tpu.memory_space<vmem>>, vector<16x32xf32>
    %4 = arith.addf %2, %3 : vector<16x32xf32>
    %c0_5 = arith.constant 0 : index
    %c0_6 = arith.constant 0 : index
    %5 = vector.load %arg4[%c0_5, %c0_6] : memref<16x32xf32, #tpu.memory_space<vmem>>, vector<16x32xf32>
    tpu.vector_store %arg4[%c0_5, %c0_6], %4 {strides = array<i32>} : memref<16x32xf32, #tpu.memory_space<vmem>>, vector<16x32xf32>,
    return
  }
  func.func @transform_0(%arg0: i32) -> (i32, i32) {
    %c0_i32 = arith.constant 0 : i32
    %c0_i32_0 = arith.constant 0 : i32
    return %arg0, %c0_i32 : i32, i32
  }
  func.func @transform_1(%arg0: i32) -> (i32, i32) {
    %c0_i32 = arith.constant 0 : i32
    %c0_i32_0 = arith.constant 0 : i32
    %c0_i32_1 = arith.constant 0 : i32
    return %c0_i32, %c0_i32_0 : i32, i32
  }
  func.func @transform_2(%arg0: i32) -> (i32, i32) {
    %c0_i32 = arith.constant 0 : i32
    %c0_i32_0 = arith.constant 0 : i32
    %c0_i32_1 = arith.constant 0 : i32
    return %c0_i32, %c0_i32_0 : i32, i32
  }
  func.func @transform_3(%arg0: i32) -> (i32, i32) {
    %c0_i32 = arith.constant 0 : i32
    %c0_i32_0 = arith.constant 0 : i32
    return %arg0, %c0_i32 : i32, i32
  }
}

</mosaic_0001>

<bundles_post_ra>
// kernel: tpu_custom_call.1
= control target key start
LH: loop header
LB: loop body
LE: loop exit
PB: predicated region body
PF: predicated region fallthrough
CT: control target
= control target key end

     0   :  { %8 = vsyncpa [#allocation3], 0  ;;  %s290_s0 = inlined_call_operand.hbm [shape: f32[16,17], index: 0, kind: input, shape index: {}]   ;;  %s291_s1 = inlined_call_operand.hbm [shape: f32[17,32], index: 1, kind: input, shape index: {}]   ;;  %s292_s2 = inlined_call_operand.hbm [shape: f32[16,32], index: 2, kind: input, shape index: {}]   ;;  %s293_s3 = inlined_call_operand.hbm [shape: f32[16,32], index: 3, kind: output, shape index: {}]  }
   0x1   :  { %9 = vsyncpa [#allocation6], 0 }
   0x2   :  { %10 = vsyncpa [#allocation4], 0  ;;  %s28_s14 = sshll.u32 %s291_s1, 4  ;;  %s240_s15 = smov [#allocation5]   ;;  %s29_s14 = int_to_ptr.hbm [resolvable:$true] %s28_s14 }
   0x3   :  { %s30_s16 = sshll.u32 %s240_s15, 4  ;;  %s15_s19 = sshll.u32 %s290_s0, 4  ;;  %s31_s16 = int_to_ptr.vmem [resolvable:$true] %s30_s16  ;;  %s16_s19 = int_to_ptr.hbm [resolvable:$true] %s15_s19 }
   0x4   :  { %s241_s20 = smov 128   ;;  %s242_s21 = smov 8  }
   0x5   :  { %36 = dma.hbm_to_vmem [thread:$0]  %s29_s14, 384, %s31_s16, [#allocation6], %s241_s20, %s241_s20, %s242_s21  }
   0x6   :  { %s243_s22 = smov [#allocation2]   ;;  %s41_s1 = sshll.u32 %s292_s2, 4  ;;  %s42_s1 = int_to_ptr.hbm [resolvable:$true] %s41_s1 }
   0x7   :  { %s17_s23 = sshll.u32 %s243_s22, 4  ;;  %s244_s0 = smov [#allocation7]   ;;  %s18_s23 = int_to_ptr.vmem [resolvable:$true] %s17_s23 }
   0x8   :  { %23 = dma.hbm_to_vmem [thread:$0]  %s16_s19, 256, %s18_s23, [#allocation3], %s241_s20, %s241_s20, %s242_s21  }
   0x9   :  { %s43_s26 = sshll.u32 %s244_s0, 4  ;;  %s44_s26 = int_to_ptr.vmem [resolvable:$true] %s43_s26 }
   0xa   :  { %49 = dma.hbm_to_vmem [thread:$0]  %s42_s1, 256, %s44_s26, [#allocation6], %s241_s20, %s241_s20, %s242_s21  }
   0xb   :  { %234 = dma.done.wait [#allocation3], 256  }
   0xc   :  { %235 = vsyncadd [#allocation3], 4294967040 }
   0xd   :  { %236 = dma.done.wait [#allocation6], 640  }
   0xe   :  { %237 = vsyncadd [#allocation6], 4294966656  ;;  %vm76_vm0 = vcmask 1040384   ;;  %v66_v0 = vld [vmem:[#allocation5 + $0x10] sm:$0x1]  ;;  %v65_v1 = vld [vmem:[#allocation5 + $0x8] sm:$0xff] }
   0xf   :  { %126 = vmatpush.msk.msra.mxu0 %vm76_vm0, %v66_v0  ;;  %129 = vmatpush.msk.msra.mxu1 %vm76_vm0, %v66_v0  ;;  %v64_v2 = vld [vmem:[#allocation5] sm:$0xff]  ;;  %v62_v3 = vld [vmem:[#allocation2] sm:$0xff]  ;;  %vm69_vm1 = vcmask 138240   ;;  %v63_v4 = vld [vmem:[#allocation2 + $0x8] sm:$0xff]  ;;  %s245_s2 = smov [#allocation8]   ;;  %s112_s30 = sshll.u32 %s293_s3, 4  ;;  %s113_s30 = int_to_ptr.hbm [resolvable:$true] %s112_s30 }
  0x10   :  { %v67_v5 = vld [vmem:[#allocation7] sm:$0xff]  ;;  %v68_v6 = vld [vmem:[#allocation7 + $0x8] sm:$0xff]  ;;  %s110_s27 = sshll.u32 %s245_s2, 4  ;;  %vm103_vm2 = vcmask 261120   ;;  %s111_s27 = int_to_ptr.vmem [resolvable:$true] %s110_s27 }
  0x11   :  { %94 = vmatpush.msra.mxu0 %v65_v1  ;;  %130 = vmatpush.msra.mxu1 %v65_v1 }
  0x13   :  { %95 = vmatpush.msra.mxu0 %v64_v2  ;;  %131 = vmatpush.msra.mxu1 %v64_v2 }
  0x14   :  { %127 = vmatmul.msk.f32.vlgmr.msra.gmra.mxu0 %vm69_vm1, %v62_v3  ;;  %128 = vmatmul.msk.f32.vlgmr.msra.gmra.mxu1 %vm69_vm1, %v63_v4 }
  0x91   :  { %v97_v7 = vpop.f32.mrf.mxu0  ;;  %v100_v8 = vpop.f32.mrf.mxu1 }
  0x92   :  { %v98_v9 = vadd.f32 %v97_v7, %v67_v5  ;;  %v101_v10 = vadd.f32 %v100_v8, %v68_v6 }
  0x94   :  { %104 = vst.msk [vmem:[#allocation8] sm:$0xff] %vm103_vm2, %v98_v9 }
  0x95   :  { %105 = vst.msk [vmem:[#allocation8 + $0x8] sm:$0xff] %vm103_vm2, %v101_v10 }
  0x96   :  { %118 = dma.vmem_to_hbm [thread:$0]  %s111_s27, 256, %s113_s30, [#allocation4], %s241_s20, %s241_s20, %s242_s21  }
  0x97   :  { %238 = dma.done.wait [#allocation4], 256  }
  0x98   :  { %239 = vsyncadd [#allocation4], 4294967040 }
  0x99   :  { %123 = vsyncpa [#allocation3], 1 }
  0x9a   :  { %124 = vsyncpa [#allocation6], 1 }
  0x9b   :  { %125 = vsyncpa [#allocation4], 1 }

</bundles_post_ra>
